<compile_context>
chip_gen: v6e
topology: v6e:2x2x1
jax: 0.10.0
libtpu: 0.0.40
codegen_flags: <defaults>
</compile_context>

<pallas_src>
import functools

import jax
import jax.numpy as jnp
from jax import lax
from jax.experimental import pallas as pl
from jax.experimental.pallas import tpu as pltpu

_NEG_INF = -1e30  # finite "minus infinity": avoids inf-inf NaNs in the online max


def _round_up(x, m):
    return (x + m - 1) // m * m


def _cdiv(a, b):
    return -(-a // b)


def _supcon_kernel(*refs, has_user_mask, inv_temp, loss_scale, n_contrast,
                   tr, tc, has_col_pad, emit_fast_path):
    if has_user_mask:
        (mask_ref, a_ref, c_ref, loss_ref,
         a_sc, m_sc, l_sc, ms_sc, pc_sc) = refs
    else:
        (alab_ref, clab_ref, a_ref, c_ref, loss_ref,
         a_sc, m_sc, l_sc, ms_sc, pc_sc) = refs

    i = pl.program_id(0)
    j = pl.program_id(1)
    nj = pl.num_programs(1)

    @pl.when(j == 0)
    def _init():
        # 1/temperature hoisted out of the column sweep: the anchor tile is
        # resident for all j, so scale it once (f32 math) into VMEM scratch
        # that feeds the MXU directly.
        a_sc[...] = (a_ref[...].astype(jnp.float32)
                     * jnp.float32(inv_temp)).astype(a_sc.dtype)
        m_sc[...] = jnp.full_like(m_sc, _NEG_INF)
        l_sc[...] = jnp.zeros_like(l_sc)
        ms_sc[...] = jnp.zeros_like(ms_sc)
        pc_sc[...] = jnp.zeros_like(pc_sc)

    # (A / T) @ C^T on the MXU; contract last dims of both operands so no
    # transpose of the contrast tile is materialized.  f32 accumulation.
    s = lax.dot_general(a_sc[...], c_ref[...],
                        dimension_numbers=(((1,), (1,)), ((), ())),
                        preferred_element_type=jnp.float32)          # [tr, tc]

    # Base positives mask (self / padding exclusion added only where needed).
    if has_user_mask:
        base_pos = mask_ref[...].astype(jnp.float32)      # int8 stream -> f32
    else:
        base_pos = (alab_ref[...] == clab_ref[...]).astype(jnp.float32)

    def _step(s_for_max, lmask_f, pos_f):
        # Online (streaming) log-sum-exp accumulation for this column block.
        m_prev = m_sc[...]
        m_new = jnp.maximum(m_prev, jnp.max(s_for_max, axis=1, keepdims=True))
        alpha = jnp.exp(m_prev - m_new)
        p = jnp.exp(s_for_max - m_new)          # <= 1, never overflows
        if lmask_f is not None:
            p = p * lmask_f                     # kill self / padded columns
        l_sc[...] = alpha * l_sc[...] + jnp.sum(p, axis=1, keepdims=True)
        m_sc[...] = m_new
        # Positive-pair running stats (algebraic form; no log_prob tile).
        ms_sc[...] = ms_sc[...] + jnp.sum(pos_f * s, axis=1, keepdims=True)
        pc_sc[...] = pc_sc[...] + jnp.sum(pos_f, axis=1, keepdims=True)

    def _special_step():
        # Tiles touching the diagonal (self-contrast) and/or the padded tail of
        # the contrast axis: rebuild the logits mask in-kernel.
        row = i * tr + lax.broadcasted_iota(jnp.int32, (tr, tc), 0)
        col = j * tc + lax.broadcasted_iota(jnp.int32, (tr, tc), 1)
        lmask = row != col
        if has_col_pad:
            col_ok = col < n_contrast
            lmask = jnp.logical_and(lmask, col_ok)
            s_for_max = jnp.where(col_ok, s, _NEG_INF)   # keep padded cols out of the max
        else:
            s_for_max = s
        lmask_f = lmask.astype(jnp.float32)
        _step(s_for_max, lmask_f, base_pos * lmask_f)

    if emit_fast_path:
        row0 = i * tr
        col0 = j * tc
        diag_overlap = jnp.logical_and(row0 < col0 + tc, col0 < row0 + tr)
        if has_col_pad:
            is_special = jnp.logical_or(diag_overlap, j == nj - 1)
        else:
            is_special = diag_overlap

        @pl.when(is_special)
        def _():
            _special_step()

        @pl.when(jnp.logical_not(is_special))
        def _():
            # Fast path: off-diagonal, fully-valid tile.  No iota / compare /
            # select / extra multiply — just max, exp, and three row sums.
            _step(s, None, base_pos)
    else:
        # Single-tile grid: the tile always overlaps the diagonal.
        _special_step()

    @pl.when(j == nj - 1)
    def _finalize():
        pc = pc_sc[...]
        log_denom = m_sc[...] + jnp.log(l_sc[...])
        # sum(mask * log_prob) == sum(mask * s) - pos_cnt * log_denom
        mean_log_prob_pos = (ms_sc[...] - pc * log_denom) / jnp.maximum(pc, 1.0)
        # Rows with zero positives (and padding rows) yield 0 here, whereas the
        # reference produces NaN from 0/0 — intentional, documented divergence.
        loss_ref[...] = jnp.where(pc > 0.0,
                                  jnp.float32(loss_scale) * mean_log_prob_pos,
                                  jnp.zeros_like(pc))


def sup_con_loss(features, labels=None, mask=None,
                 temperature=0.07, contrast_mode='all', base_temperature=0.07,
                 block_rows=512, block_cols=1024,
                 compute_dtype=None,      # e.g. jnp.bfloat16 to halve HBM + use bf16 MXU
                 min_row_blocks=1,        # set 2 on v7x (2 TensorCores/chip)
                 contrast_buffers=2,      # raise to 3 on v5e if DMA is exposed
                 vmem_limit_bytes=None):  # default 56 MiB (fits v7x); raise on v5e/v6e
    """JAX/Pallas port of SupConLoss.forward (contrast_mode 'all' or 'one')."""
    if features.ndim < 3:
        raise ValueError("`features` needs to be [bsz, n_views, ...]")
    if features.ndim > 3:
        features = features.reshape(features.shape[0], features.shape[1], -1)
    if labels is not None and mask is not None:
        raise ValueError("Cannot define both `labels` and `mask`")

    bsz, n_views, dim = features.shape
    contrast_count = n_views
    # view-major concat: cat(unbind(features, dim=1), dim=0)
    contrast_feature = jnp.swapaxes(features, 0, 1).reshape(n_views * bsz, dim)

    if contrast_mode == 'one':
        anchor_feature = features[:, 0]
        anchor_count = 1
    elif contrast_mode == 'all':
        anchor_feature = contrast_feature
        anchor_count = contrast_count
    else:
        raise ValueError(f"Unknown mode: {contrast_mode}")

    n_anchor = anchor_count * bsz
    n_contrast = contrast_count * bsz
    has_user_mask = mask is not None

    feat_dtype = (jnp.dtype(compute_dtype) if compute_dtype is not None
                  else jnp.dtype(features.dtype))
    feat_bytes = feat_dtype.itemsize

    # ---- tile sizes ----------------------------------------------------------
    # int8 mask tiles want a sublane granule of 32; feature tiles only need 8.
    row_granule = 32 if has_user_mask else 8
    tr = _round_up(min(block_rows,
                       _round_up(_cdiv(n_anchor, max(1, min_row_blocks)),
                                 row_granule)), row_granule)
    tc = _round_up(min(block_cols, _round_up(n_contrast, 128)), 128)
    d_pad = _round_up(dim, 128)                 # full MXU contraction width

    # ---- VMEM budget (double-buffered inputs + score/elementwise temps +
    #      scratches incl. lane padding of the (tr,1) stat buffers) ------------
    if vmem_limit_bytes is None:
        vmem_limit_bytes = 56 * 1024 * 1024     # <= v7x 64 MiB physical VMEM
    bufs = max(2, int(contrast_buffers))
    mask_bytes = 1 if has_user_mask else 0

    def _vmem_est(tr_, tc_):
        inputs = 2 * tr_ * d_pad * feat_bytes + bufs * tc_ * d_pad * feat_bytes
        maskb = 2 * tr_ * tc_ * mask_bytes
        temps = 3 * tr_ * tc_ * 4                         # score + fused temps
        scratch = tr_ * d_pad * (feat_bytes + 4) + 4 * tr_ * 128 * 4
        outb = 2 * tr_ * 128 * 4
        return inputs + maskb + temps + scratch + outb

    budget = int(vmem_limit_bytes * 0.85)
    while _vmem_est(tr, tc) > budget and tc > 128:
        tc = max(128, _round_up(tc // 2, 128))
    while _vmem_est(tr, tc) > budget and tr > 64:
        tr = max(64, _round_up(tr // 2, row_granule))

    n_row_pad = _round_up(n_anchor, tr)
    n_col_pad = _round_up(n_contrast, tc)
    has_col_pad = n_col_pad != n_contrast
    n_row_blocks = n_row_pad // tr
    n_col_blocks = n_col_pad // tc

    # ---- feature streams (dtype cast in the wrapper halves HBM traffic) ------
    a_pad = jnp.pad(anchor_feature.astype(feat_dtype),
                    ((0, n_row_pad - n_anchor), (0, d_pad - dim)))
    c_pad = jnp.pad(contrast_feature.astype(feat_dtype),
                    ((0, n_col_pad - n_contrast), (0, d_pad - dim)))

    if has_user_mask:
        # Binary mask assumed (per the module spec); streamed as int8 (4x less
        # HBM than f32) and cast in-kernel.
        # TODO(synk): a modular index_map over the raw (bsz, bsz) mask would
        # avoid this O(N^2) tiled materialization when tr, tc divide bsz.
        mask_full = jnp.tile(mask.astype(jnp.int8), (anchor_count, contrast_count))
        mask_full = jnp.pad(mask_full, ((0, n_row_pad - n_anchor),
                                        (0, n_col_pad - n_contrast)))
        mask_inputs = (mask_full,)
        mask_specs = [pl.BlockSpec((tr, tc), lambda i, j: (i, j))]
    else:
        if labels is None:
            base = jnp.arange(bsz, dtype=jnp.int32)       # SimCLR: mask = eye(bsz)
        else:
            base = jnp.asarray(labels).reshape(-1).astype(jnp.int32)
            if base.shape[0] != bsz:
                raise ValueError("Num of labels does not match num of features")
        alab = jnp.pad(jnp.tile(base, anchor_count),
                       (0, n_row_pad - n_anchor), constant_values=-1)
        clab = jnp.pad(jnp.tile(base, contrast_count),
                       (0, n_col_pad - n_contrast), constant_values=-2)
        mask_inputs = (alab.reshape(n_row_pad, 1), clab.reshape(1, n_col_pad))
        mask_specs = [pl.BlockSpec((tr, 1), lambda i, j: (i, 0)),
                      pl.BlockSpec((1, tc), lambda i, j: (0, j))]

    kernel = functools.partial(
        _supcon_kernel,
        has_user_mask=has_user_mask,
        inv_temp=1.0 / float(temperature),
        loss_scale=-(float(temperature) / float(base_temperature)),
        n_contrast=n_contrast, tr=tr, tc=tc,
        has_col_pad=has_col_pad,
        emit_fast_path=(n_row_blocks > 1 or n_col_blocks > 1))

    c_spec_kwargs = {}
    if bufs > 2:
        c_spec_kwargs["pipeline_mode"] = pl.Buffered(bufs)
    c_spec = pl.BlockSpec((tc, d_pad), lambda i, j: (j, 0), **c_spec_kwargs)

    grid_spec = pltpu.PrefetchScalarGridSpec(
        num_scalar_prefetch=0,
        grid=(n_row_blocks, n_col_blocks),
        in_specs=mask_specs + [
            pl.BlockSpec((tr, d_pad), lambda i, j: (i, 0)),   # anchor rows (resident over j)
            c_spec,                                           # contrast cols
        ],
        out_specs=pl.BlockSpec((tr, 1), lambda i, j: (i, 0)),
        scratch_shapes=[
            pltpu.VMEM((tr, d_pad), feat_dtype),              # scaled anchor tile
            pltpu.VMEM((tr, 1), jnp.float32),                 # running max m
            pltpu.VMEM((tr, 1), jnp.float32),                 # running sum-exp l
            pltpu.VMEM((tr, 1), jnp.float32),                 # sum(mask*s)
            pltpu.VMEM((tr, 1), jnp.float32),                 # positive count
        ],
    )

    per_row = pl.pallas_call(
        kernel,
        grid_spec=grid_spec,
        out_shape=jax.ShapeDtypeStruct((n_row_pad, 1), jnp.float32),
        compiler_params=pltpu.CompilerParams(
            dimension_semantics=("parallel", "arbitrary"),
            vmem_limit_bytes=int(vmem_limit_bytes)),
    )(*mask_inputs, a_pad, c_pad)

    # loss.view(anchor_count, batch_size).mean() == mean over all anchor rows
    return jnp.sum(per_row[:n_anchor, 0]) / n_anchor


def _sup_con_loss_ref(features, labels=None, mask=None, temperature=0.07,
                      contrast_mode='all', base_temperature=0.07):
    """Pure-JAX reference (mirrors the torch module) for correctness checks."""
    bsz, n_views, dim = features.shape
    if mask is None:
        if labels is None:
            mask = jnp.eye(bsz, dtype=jnp.float32)
        else:
            labels = labels.reshape(-1, 1)
            mask = (labels == labels.T).astype(jnp.float32)
    else:
        mask = mask.astype(jnp.float32)
    cf = jnp.swapaxes(features, 0, 1).reshape(n_views * bsz, dim)
    if contrast_mode == 'one':
        af, anchor_count = features[:, 0], 1
    else:
        af, anchor_count = cf, n_views
    s = (af @ cf.T) / temperature
    logits = s - jnp.max(s, axis=1, keepdims=True)
    na, nc = anchor_count * bsz, n_views * bsz
    mask = jnp.tile(mask, (anchor_count, n_views))
    lmask = 1.0 - jnp.eye(na, nc, dtype=jnp.float32)
    mask = mask * lmask
    exp_logits = jnp.exp(logits) * lmask
    log_prob = logits - jnp.log(exp_logits.sum(1, keepdims=True))
    mlp = (mask * log_prob).sum(1) / mask.sum(1)
    return (-(temperature / base_temperature) * mlp).mean()


if __name__ == "__main__":
    key = jax.random.PRNGKey(0)
    k1, k2, k3, k4 = jax.random.split(key, 4)

    # ---- small single-tile shapes: labels / SimCLR / 'one' / user-mask paths
    bsz, n_views, feat_dim = 8, 2, 32
    feats = jax.random.normal(k1, (bsz, n_views, feat_dim), dtype=jnp.float32)
    feats = feats / jnp.linalg.norm(feats, axis=-1, keepdims=True)
    labels = jax.random.randint(k2, (bsz,), 0, 4)

    loss_sup = sup_con_loss(feats, labels=labels)
    jax.block_until_ready(loss_sup)
    ref_sup = _sup_con_loss_ref(feats, labels=labels)
    assert jnp.allclose(loss_sup, ref_sup, atol=5e-4, rtol=5e-4), (loss_sup, ref_sup)

    loss_simclr = sup_con_loss(feats)
    jax.block_until_ready(loss_simclr)
    ref_simclr = _sup_con_loss_ref(feats)
    assert jnp.allclose(loss_simclr, ref_simclr, atol=5e-4, rtol=5e-4), (loss_simclr, ref_simclr)

    loss_one = sup_con_loss(feats, labels=labels, contrast_mode='one')
    jax.block_until_ready(loss_one)
    ref_one = _sup_con_loss_ref(feats, labels=labels, contrast_mode='one')
    assert jnp.allclose(loss_one, ref_one, atol=5e-4, rtol=5e-4), (loss_one, ref_one)

    user_mask = (labels[:, None] == labels[None, :]).astype(jnp.float32)
    loss_mask = sup_con_loss(feats, mask=user_mask)
    jax.block_until_ready(loss_mask)
    assert jnp.allclose(loss_mask, ref_sup, atol=5e-4, rtol=5e-4), (loss_mask, ref_sup)

    # ---- multi-tile shapes: exercises fast/slow tile paths, column padding,
    #      >=2 row blocks (v7x megacore), int8 mask streaming, bf16 MXU feed.
    bsz2, n_views2, feat_dim2 = 96, 2, 64
    feats2 = jax.random.normal(k3, (bsz2, n_views2, feat_dim2), dtype=jnp.float32)
    feats2 = feats2 / jnp.linalg.norm(feats2, axis=-1, keepdims=True)
    labels2 = jax.random.randint(k4, (bsz2,), 0, 6)
    ref2 = _sup_con_loss_ref(feats2, labels=labels2)

    loss2 = sup_con_loss(feats2, labels=labels2, block_rows=64, block_cols=128,
                         min_row_blocks=2)
    jax.block_until_ready(loss2)
    assert jnp.allclose(loss2, ref2, atol=5e-4, rtol=5e-4), (loss2, ref2)

    user_mask2 = (labels2[:, None] == labels2[None, :]).astype(jnp.float32)
    loss2_mask = sup_con_loss(feats2, mask=user_mask2,
                              block_rows=64, block_cols=128)
    jax.block_until_ready(loss2_mask)
    assert jnp.allclose(loss2_mask, ref2, atol=5e-4, rtol=5e-4), (loss2_mask, ref2)

    loss2_bf16 = sup_con_loss(feats2, labels=labels2, block_rows=64, block_cols=128,
                              compute_dtype=jnp.bfloat16)
    jax.block_until_ready(loss2_bf16)
    assert jnp.allclose(loss2_bf16, ref2, atol=1.5e-1, rtol=5e-2), (loss2_bf16, ref2)

    print("KERNEL_OK")
</pallas_src>

<mosaic_0001>
module attributes {stable_mosaic.version = 11 : i64} {
  func.func @_supcon_kernel(%arg0: i32, %arg1: i32, %arg2: memref<16x1xi32, #tpu.memory_space<vmem>>, %arg3: memref<1x128xi32, #tpu.memory_space<vmem>>, %arg4: memref<16x128xf32, #tpu.memory_space<vmem>>, %arg5: memref<128x128xf32, #tpu.memory_space<vmem>>, %arg6: memref<16x1xf32, #tpu.memory_space<vmem>>, %arg7: memref<16x128xf32, #tpu.memory_space<vmem>>, %arg8: memref<16x1xf32, #tpu.memory_space<vmem>>, %arg9: memref<16x1xf32, #tpu.memory_space<vmem>>, %arg10: memref<16x1xf32, #tpu.memory_space<vmem>>, %arg11: memref<16x1xf32, #tpu.memory_space<vmem>>) attributes {dimension_semantics = [#tpu.dimension_semantics<parallel>, #tpu.dimension_semantics<arbitrary>], iteration_bounds = array<i64: 1, 1>, scalar_prefetch = 0 : i64, scratch_operands = 5 : i64, tpu.core_type = #tpu.core_type<tc>, window_params = [{transform_indices = @transform_0, window_bounds = array<i64: 16, 1>}, {transform_indices = @transform_1, window_bounds = array<i64: 1, 128>}, {transform_indices = @transform_2, window_bounds = array<i64: 16, 128>}, {transform_indices = @transform_3, window_bounds = array<i64: 128, 128>}, {transform_indices = @transform_4, window_bounds = array<i64: 16, 1>}]} {
    %c0_i32 = arith.constant 0 : i32
    %0 = arith.cmpi eq, %arg1, %c0_i32 : i32
    %1 = arith.extui %0 : i1 to i32
    %c0_i32_0 = arith.constant 0 : i32
    %2 = arith.cmpi ne, %1, %c0_i32_0 : i32
    scf.if %2 {
      %c0_32 = arith.constant 0 : index
      %c0_33 = arith.constant 0 : index
      %61 = vector.load %arg4[%c0_32, %c0_33] : memref<16x128xf32, #tpu.memory_space<vmem>>, vector<16x128xf32>
      %cst_34 = arith.constant 14.2857141 : f32
      %62 = vector.broadcast %cst_34 : f32 to vector<16x128xf32>
      %63 = arith.mulf %61, %62 : vector<16x128xf32>
      %c0_35 = arith.constant 0 : index
      %c0_36 = arith.constant 0 : index
      %64 = vector.load %arg7[%c0_35, %c0_36] : memref<16x128xf32, #tpu.memory_space<vmem>>, vector<16x128xf32>
      tpu.vector_store %arg7[%c0_35, %c0_36], %63 {strides = array<i32>} : memref<16x128xf32, #tpu.memory_space<vmem>>, vector<16x128xf32>,
      %cst_37 = arith.constant -1.000000e+30 : f32
      %65 = vector.broadcast %cst_37 : f32 to vector<16x1xf32>
      %c0_38 = arith.constant 0 : index
      %c0_39 = arith.constant 0 : index
      %66 = vector.load %arg8[%c0_38, %c0_39] : memref<16x1xf32, #tpu.memory_space<vmem>>, vector<16x1xf32>
      tpu.vector_store %arg8[%c0_38, %c0_39], %65 {strides = array<i32>} : memref<16x1xf32, #tpu.memory_space<vmem>>, vector<16x1xf32>,
      %cst_40 = arith.constant 0.000000e+00 : f32
      %67 = vector.broadcast %cst_40 : f32 to vector<16x1xf32>
      %c0_41 = arith.constant 0 : index
      %c0_42 = arith.constant 0 : index
      %68 = vector.load %arg9[%c0_41, %c0_42] : memref<16x1xf32, #tpu.memory_space<vmem>>, vector<16x1xf32>
      tpu.vector_store %arg9[%c0_41, %c0_42], %67 {strides = array<i32>} : memref<16x1xf32, #tpu.memory_space<vmem>>, vector<16x1xf32>,
      %cst_43 = arith.constant 0.000000e+00 : f32
      %69 = vector.broadcast %cst_43 : f32 to vector<16x1xf32>
      %c0_44 = arith.constant 0 : index
      %c0_45 = arith.constant 0 : index
      %70 = vector.load %arg10[%c0_44, %c0_45] : memref<16x1xf32, #tpu.memory_space<vmem>>, vector<16x1xf32>
      tpu.vector_store %arg10[%c0_44, %c0_45], %69 {strides = array<i32>} : memref<16x1xf32, #tpu.memory_space<vmem>>, vector<16x1xf32>,
      %cst_46 = arith.constant 0.000000e+00 : f32
      %71 = vector.broadcast %cst_46 : f32 to vector<16x1xf32>
      %c0_47 = arith.constant 0 : index
      %c0_48 = arith.constant 0 : index
      %72 = vector.load %arg11[%c0_47, %c0_48] : memref<16x1xf32, #tpu.memory_space<vmem>>, vector<16x1xf32>
      tpu.vector_store %arg11[%c0_47, %c0_48], %71 {strides = array<i32>} : memref<16x1xf32, #tpu.memory_space<vmem>>, vector<16x1xf32>,
    } else {
    }
    %c0 = arith.constant 0 : index
    %c0_1 = arith.constant 0 : index
    %3 = vector.load %arg7[%c0, %c0_1] : memref<16x128xf32, #tpu.memory_space<vmem>>, vector<16x128xf32>
    %c0_2 = arith.constant 0 : index
    %c0_3 = arith.constant 0 : index
    %4 = vector.load %arg5[%c0_2, %c0_3] : memref<128x128xf32, #tpu.memory_space<vmem>>, vector<128x128xf32>
    %cst = arith.constant dense<0.000000e+00> : vector<16x128xf32>
    %5 = tpu.matmul %3, %4, %cst {dimension_numbers = #tpu.dot_dimension_numbers<[1], [1], [0], [0], [0, 0, 1, 0], [], []>} : vector<16x128xf32>, vector<128x128xf32>, vector<16x128xf32> -> vector<16x128xf32>
    %c0_4 = arith.constant 0 : index
    %c0_5 = arith.constant 0 : index
    %6 = vector.load %arg2[%c0_4, %c0_5] : memref<16x1xi32, #tpu.memory_space<vmem>>, vector<16x1xi32>
    %c0_6 = arith.constant 0 : index
    %c0_7 = arith.constant 0 : index
    %7 = vector.load %arg3[%c0_6, %c0_7] : memref<1x128xi32, #tpu.memory_space<vmem>>, vector<1x128xi32>
    %8 = vector.broadcast %6 : vector<16x1xi32> to vector<16x128xi32>
    %9 = vector.broadcast %7 : vector<1x128xi32> to vector<16x128xi32>
    %10 = arith.cmpi eq, %8, %9 : vector<16x128xi32>
    %11 = arith.extui %10 : vector<16x128xi1> to vector<16x128xi32>
    %12 = arith.sitofp %11 : vector<16x128xi32> to vector<16x128xf32>
    %c16_i32 = arith.constant 16 : i32
    %13 = arith.muli %arg0, %c16_i32 : i32
    %14 = tpu.iota {dimensions = array<i32: 0>} : vector<16x128xi32>
    %15 = vector.broadcast %13 : i32 to vector<16x128xi32>
    %16 = arith.addi %15, %14 : vector<16x128xi32>
    %c128_i32 = arith.constant 128 : i32
    %17 = arith.muli %arg1, %c128_i32 : i32
    %18 = tpu.iota {dimensions = array<i32: 1>} : vector<16x128xi32>
    %19 = vector.broadcast %17 : i32 to vector<16x128xi32>
    %20 = arith.addi %19, %18 : vector<16x128xi32>
    %21 = arith.cmpi ne, %16, %20 : vector<16x128xi32>
    %c16_i32_8 = arith.constant 16 : i32
    %22 = vector.broadcast %c16_i32_8 : i32 to vector<16x128xi32>
    %23 = arith.cmpi slt, %20, %22 : vector<16x128xi32>
    %24 = arith.andi %21, %23 : vector<16x128xi1>
    %cst_9 = arith.constant -1.000000e+30 : f32
    %25 = vector.broadcast %cst_9 : f32 to vector<16x128xf32>
    %26 = arith.select %23, %5, %25 : vector<16x128xi1>, vector<16x128xf32>
    %27 = arith.extui %24 : vector<16x128xi1> to vector<16x128xi32>
    %28 = arith.sitofp %27 : vector<16x128xi32> to vector<16x128xf32>
    %29 = arith.mulf %12, %28 : vector<16x128xf32>
    %c0_10 = arith.constant 0 : index
    %c0_11 = arith.constant 0 : index
    %30 = vector.load %arg8[%c0_10, %c0_11] : memref<16x1xf32, #tpu.memory_space<vmem>>, vector<16x1xf32>
    %cst_12 = arith.constant dense<0xFF800000> : vector<16xf32>
    %31 = vector.multi_reduction <maximumf>, %26, %cst_12 [1] : vector<16x128xf32> to vector<16xf32>
    %32 = vector.shape_cast %31 : vector<16xf32> to vector<16x1xf32>
    %33 = arith.maximumf %30, %32 : vector<16x1xf32>
    %34 = arith.subf %30, %33 : vector<16x1xf32>
    %35 = math.exp %34 : vector<16x1xf32>
    %36 = vector.broadcast %33 : vector<16x1xf32> to vector<16x128xf32>
    %37 = arith.subf %26, %36 : vector<16x128xf32>
    %38 = math.exp %37 : vector<16x128xf32>
    %39 = arith.mulf %38, %28 : vector<16x128xf32>
    %c0_13 = arith.constant 0 : index
    %c0_14 = arith.constant 0 : index
    %40 = vector.load %arg9[%c0_13, %c0_14] : memref<16x1xf32, #tpu.memory_space<vmem>>, vector<16x1xf32>
    %41 = arith.mulf %35, %40 : vector<16x1xf32>
    %cst_15 = arith.constant dense<0.000000e+00> : vector<16xf32>
    %42 = vector.multi_reduction <add>, %39, %cst_15 [1] : vector<16x128xf32> to vector<16xf32>
    %43 = vector.shape_cast %42 : vector<16xf32> to vector<16x1xf32>
    %44 = arith.addf %41, %43 : vector<16x1xf32>
    %c0_16 = arith.constant 0 : index
    %c0_17 = arith.constant 0 : index
    %45 = vector.load %arg9[%c0_16, %c0_17] : memref<16x1xf32, #tpu.memory_space<vmem>>, vector<16x1xf32>
    tpu.vector_store %arg9[%c0_16, %c0_17], %44 {strides = array<i32>} : memref<16x1xf32, #tpu.memory_space<vmem>>, vector<16x1xf32>,
    %c0_18 = arith.constant 0 : index
    %c0_19 = arith.constant 0 : index
    %46 = vector.load %arg8[%c0_18, %c0_19] : memref<16x1xf32, #tpu.memory_space<vmem>>, vector<16x1xf32>
    tpu.vector_store %arg8[%c0_18, %c0_19], %33 {strides = array<i32>} : memref<16x1xf32, #tpu.memory_space<vmem>>, vector<16x1xf32>,
    %c0_20 = arith.constant 0 : index
    %c0_21 = arith.constant 0 : index
    %47 = vector.load %arg10[%c0_20, %c0_21] : memref<16x1xf32, #tpu.memory_space<vmem>>, vector<16x1xf32>
    %48 = arith.mulf %29, %5 : vector<16x128xf32>
    %cst_22 = arith.constant dense<0.000000e+00> : vector<16xf32>
    %49 = vector.multi_reduction <add>, %48, %cst_22 [1] : vector<16x128xf32> to vector<16xf32>
    %50 = vector.shape_cast %49 : vector<16xf32> to vector<16x1xf32>
    %51 = arith.addf %47, %50 : vector<16x1xf32>
    %c0_23 = arith.constant 0 : index
    %c0_24 = arith.constant 0 : index
    %52 = vector.load %arg10[%c0_23, %c0_24] : memref<16x1xf32, #tpu.memory_space<vmem>>, vector<16x1xf32>
    tpu.vector_store %arg10[%c0_23, %c0_24], %51 {strides = array<i32>} : memref<16x1xf32, #tpu.memory_space<vmem>>, vector<16x1xf32>,
    %c0_25 = arith.constant 0 : index
    %c0_26 = arith.constant 0 : index
    %53 = vector.load %arg11[%c0_25, %c0_26] : memref<16x1xf32, #tpu.memory_space<vmem>>, vector<16x1xf32>
    %cst_27 = arith.constant dense<0.000000e+00> : vector<16xf32>
    %54 = vector.multi_reduction <add>, %29, %cst_27 [1] : vector<16x128xf32> to vector<16xf32>
    %55 = vector.shape_cast %54 : vector<16xf32> to vector<16x1xf32>
    %56 = arith.addf %53, %55 : vector<16x1xf32>
    %c0_28 = arith.constant 0 : index
    %c0_29 = arith.constant 0 : index
    %57 = vector.load %arg11[%c0_28, %c0_29] : memref<16x1xf32, #tpu.memory_space<vmem>>, vector<16x1xf32>
    tpu.vector_store %arg11[%c0_28, %c0_29], %56 {strides = array<i32>} : memref<16x1xf32, #tpu.memory_space<vmem>>, vector<16x1xf32>,
    %c0_i32_30 = arith.constant 0 : i32
    %58 = arith.cmpi eq, %arg1, %c0_i32_30 : i32
    %59 = arith.extui %58 : i1 to i32
    %c0_i32_31 = arith.constant 0 : i32
    %60 = arith.cmpi ne, %59, %c0_i32_31 : i32
    scf.if %60 {
      %c0_32 = arith.constant 0 : index
      %c0_33 = arith.constant 0 : index
      %61 = vector.load %arg11[%c0_32, %c0_33] : memref<16x1xf32, #tpu.memory_space<vmem>>, vector<16x1xf32>
      %c0_34 = arith.constant 0 : index
      %c0_35 = arith.constant 0 : index
      %62 = vector.load %arg8[%c0_34, %c0_35] : memref<16x1xf32, #tpu.memory_space<vmem>>, vector<16x1xf32>
      %c0_36 = arith.constant 0 : index
      %c0_37 = arith.constant 0 : index
      %63 = vector.load %arg9[%c0_36, %c0_37] : memref<16x1xf32, #tpu.memory_space<vmem>>, vector<16x1xf32>
      %64 = math.log %63 : vector<16x1xf32>
      %65 = arith.addf %62, %64 : vector<16x1xf32>
      %c0_38 = arith.constant 0 : index
      %c0_39 = arith.constant 0 : index
      %66 = vector.load %arg10[%c0_38, %c0_39] : memref<16x1xf32, #tpu.memory_space<vmem>>, vector<16x1xf32>
      %67 = arith.mulf %61, %65 : vector<16x1xf32>
      %68 = arith.subf %66, %67 : vector<16x1xf32>
      %cst_40 = arith.constant 1.000000e+00 : f32
      %69 = vector.broadcast %cst_40 : f32 to vector<16x1xf32>
      %70 = arith.maximumf %61, %69 : vector<16x1xf32>
      %71 = arith.divf %68, %70 : vector<16x1xf32>
      %cst_41 = arith.constant 0.000000e+00 : f32
      %72 = vector.broadcast %cst_41 : f32 to vector<16x1xf32>
      %73 = arith.cmpf ogt, %61, %72 : vector<16x1xf32>
      %cst_42 = arith.constant -1.000000e+00 : f32
      %74 = vector.broadcast %cst_42 : f32 to vector<16x1xf32>
      %75 = arith.mulf %74, %71 : vector<16x1xf32>
      %cst_43 = arith.constant 0.000000e+00 : f32
      %76 = vector.broadcast %cst_43 : f32 to vector<16x1xf32>
      %77 = arith.select %73, %75, %76 : vector<16x1xi1>, vector<16x1xf32>
      %c0_44 = arith.constant 0 : index
      %c0_45 = arith.constant 0 : index
      %78 = vector.load %arg6[%c0_44, %c0_45] : memref<16x1xf32, #tpu.memory_space<vmem>>, vector<16x1xf32>
      tpu.vector_store %arg6[%c0_44, %c0_45], %77 {strides = array<i32>} : memref<16x1xf32, #tpu.memory_space<vmem>>, vector<16x1xf32>,
    } else {
    }
    return
  }
  func.func @transform_0(%arg0: i32, %arg1: i32) -> (i32, i32) {
    %c0_i32 = arith.constant 0 : i32
    %c0_i32_0 = arith.constant 0 : i32
    return %arg0, %c0_i32 : i32, i32
  }
  func.func @transform_1(%arg0: i32, %arg1: i32) -> (i32, i32) {
    %c0_i32 = arith.constant 0 : i32
    %c0_i32_0 = arith.constant 0 : i32
    return %c0_i32, %arg1 : i32, i32
  }
  func.func @transform_2(%arg0: i32, %arg1: i32) -> (i32, i32) {
    %c0_i32 = arith.constant 0 : i32
    %c0_i32_0 = arith.constant 0 : i32
    return %arg0, %c0_i32 : i32, i32
  }
  func.func @transform_3(%arg0: i32, %arg1: i32) -> (i32, i32) {
    %c0_i32 = arith.constant 0 : i32
    %c0_i32_0 = arith.constant 0 : i32
    return %arg1, %c0_i32 : i32, i32
  }
  func.func @transform_4(%arg0: i32, %arg1: i32) -> (i32, i32) {
    %c0_i32 = arith.constant 0 : i32
    %c0_i32_0 = arith.constant 0 : i32
    return %arg0, %c0_i32 : i32, i32
  }
}

</mosaic_0001>

<bundles_post_ra>
// kernel: tpu_custom_call.1
= control target key start
LH: loop header
LB: loop body
LE: loop exit
PB: predicated region body
PF: predicated region fallthrough
CT: control target
= control target key end

     0   :  { %9 = vsyncpa [#allocation8], 0  ;;  %s400_s15 = smov [#allocation7]   ;;  %s481_s0 = inlined_call_operand.vmem [shape: s32[16,1], index: 0, kind: input, shape index: {}]   ;;  %s482_s1 = inlined_call_operand.vmem [shape: s32[1,128], index: 1, kind: input, shape index: {}]   ;;  %s483_s2 = inlined_call_operand.vmem [shape: f32[16,128], index: 2, kind: input, shape index: {}]   ;;  %s484_s3 = inlined_call_operand.hbm [shape: f32[128,128], index: 3, kind: input, shape index: {}]   ;;  %s485_s4 = inlined_call_operand.vmem [shape: f32[16,1], index: 4, kind: output, shape index: {}]  }
   0x1   :  { %s21_s16 = sshll.u32 %s400_s15, 4  ;;  %s22_s16 = int_to_ptr.vmem [resolvable:$true] %s21_s16 }
   0x2   :  { %s386_s17 = scalar_lea.vmem %s22_s16, 2048  ;;  %p391_p1 = scmp.lt.s32.totalorder %s22_s16, %s22_s16 }
   0x3   :  { %p387_p0 = scmp.ne.s32.totalorder %s22_s16, %s386_s17  ;;  %p392_p2 = scmp.lt.s32.totalorder %s386_s17, %s386_s17 }
   0x5   :  { %p393_p3 = por %p392_p2, %p391_p1 }
   0x7   :  { %p394_p4 = pnand %p393_p3, %p387_p0 }
   0x9   :  { %397 = shalt.err (!%p394_p4)
}
   0xa   :  { %s401_s18 = smov 128   ;;  %s402_s19 = smov 8  }
   0xb   :  { %27 = dma.hbm_to_vmem [thread:$0]  %s484_s3, 2048, %s22_s16, [#allocation8], %s401_s18, %s401_s18, %s402_s19  }
   0xc   :  { %398 = dma.done.wait [#allocation8], 2048  }
   0xd   :  { %399 = vsyncadd [#allocation8], 4294965248  ;;  %v67_v0 = vld [vmem:[#allocation7 + $0x78] sm:$0xff]  ;;  %v66_v1 = vld [vmem:[#allocation7 + $0x70] sm:$0xff]  ;;  %v403_v20 = vmov 0   ;;  %vm41_vm0 = vcmask 7168   ;;  %v163_v22 = vlaneseq }
   0xe   :  { %319 = vmatprep.subr.mxu0 %v67_v0  ;;  %v65_v2 = vld [vmem:[#allocation7 + $0x68] sm:$0xff]  ;;  %v35_v3 = vld [vmem:[%s483_s2] sm:$0xff]  ;;  %v63_v6 = vld [vmem:[#allocation7 + $0x58] sm:$0xff]  ;;  %361 = vset.pattern.permute.xlu0 %v403_v20  ;;  %v404_v21 = vmov -1e+30   ;;  %v405_v28 = vmov 0.0  }
   0xf   :  { %320 = vmatpush3.xpose.msra.mxu0 %v67_v0  ;;  %v37_v4 = vmul.f32 14.285714, %v35_v3  ;;  %v64_v5 = vld [vmem:[#allocation7 + $0x60] sm:$0xff]  ;;  %v62_v7 = vld [vmem:[#allocation7 + $0x50] sm:$0xff]  ;;  %v61_v8 = vld [vmem:[#allocation7 + $0x48] sm:$0xff]  ;;  %360 = vset.pattern.permute.xlu1 %v403_v20  ;;  %42 = vst.msk [vmem:[#allocation3] sm:$0xff] %vm41_vm0, %v404_v21 }
  0x10   :  { %321 = vmatprep.subr.mxu0 %v66_v1  ;;  %v60_v9 = vld [vmem:[#allocation7 + $0x40] sm:$0xff]  ;;  %v59_v10 = vld [vmem:[#allocation7 + $0x38] sm:$0xff]  ;;  %v58_v11 = vld [vmem:[#allocation7 + $0x30] sm:$0xff]  ;;  %43 = vst.msk [vmem:[#allocation3 + $0x8] sm:$0xff] %vm41_vm0, %v404_v21  ;;  %v171_v23 = vand.u32 127, %v163_v22  ;;  %v164_v34 = vshrl.u32 %v163_v22, 7 }
  0x11   :  { %351 = vmatprep.mubr.f32.mxu0 %v37_v4  ;;  %v57_v12 = vld [vmem:[#allocation7 + $0x28] sm:$0xff]  ;;  %v56_v13 = vld [vmem:[#allocation7 + $0x20] sm:$0xff]  ;;  %v55_v14 = vld [vmem:[#allocation7 + $0x18] sm:$0xff]  ;;  %44 = vst.msk [vmem:[#allocation4] sm:$0xff] %vm41_vm0, %v405_v28 }
  0x12   :  { %v54_v15 = vld [vmem:[#allocation7 + $0x10] sm:$0xff]  ;;  %v53_v16 = vld [vmem:[#allocation7 + $0x8] sm:$0xff]  ;;  %v52_v17 = vld [vmem:[#allocation7] sm:$0xff]  ;;  %vm176_vm1 = vcmp.lt.s32.totalorder %v171_v23, 16  ;;  %45 = vst.msk [vmem:[#allocation4 + $0x8] sm:$0xff] %vm41_vm0, %v405_v28  ;;  %vm174_vm2 = vcmp.ne.s32.totalorder %v164_v34, %v171_v23  ;;  %v165_v51 = vadd.s32 8, %v164_v34 }
  0x13   :  { %322 = vmatpush3.xpose.msra.mxu0 %v66_v1  ;;  %v36_v18 = vld [vmem:[%s483_s2 + $0x8] sm:$0xff]  ;;  %46 = vst.msk [vmem:[#allocation5] sm:$0xff] %vm41_vm0, %v405_v28  ;;  %47 = vst.msk [vmem:[#allocation5 + $0x8] sm:$0xff] %vm41_vm0, %v405_v28  ;;  %v143_v29 = vld [vmem:[%s481_s0] sm:$0xff] }
  0x14   :  { %323 = vmatprep.subr.mxu0 %v65_v2  ;;  %v38_v19 = vmul.f32 14.285714, %v36_v18  ;;  %48 = vst.msk [vmem:[#allocation6] sm:$0xff] %vm41_vm0, %v405_v28  ;;  %49 = vst.msk [vmem:[#allocation6 + $0x8] sm:$0xff] %vm41_vm0, %v405_v28  ;;  %v144_v39 = vld [vmem:[%s481_s0 + $0x8] sm:$0xff]  ;;  %vm175_vm5 = vcmp.ne.s32.totalorder %v165_v51, %v171_v23 }
  0x15   :  { %vm177_vm3 = vmand %vm174_vm2, %vm176_vm1  ;;  %v296_v40 = vld [vmem:[%s482_s1] ss:$0 sm:$0xff] }
  0x16   :  { %v187_v30 = vld [vmem:[#allocation3] sm:$0xff]  ;;  %v299_v42 = vsel %vm177_vm3, 1.0, %v405_v28  ;;  %vm178_vm6 = vmand %vm175_vm5, %vm176_vm1 }
  0x17   :  { %324 = vmatpush3.xpose.msra.mxu0 %v65_v2  ;;  %v188_v33 = vld [vmem:[#allocation3 + $0x8] sm:$0xff]  ;;  %v300_v56 = vsel %vm178_vm6, 1.0, %v405_v28 }
  0x18   :  { %325 = vmatprep.subr.mxu0 %v64_v5  ;;  %v219_v4 = vld [vmem:[#allocation4] sm:$0xff] }
  0x1a   :  { %v234_v18 = vld [vmem:[#allocation5] sm:$0xff]  ;;  %v235_v23 = vld [vmem:[#allocation5 + $0x8] sm:$0xff] }
  0x1b   :  { %326 = vmatpush3.xpose.msra.mxu0 %v64_v5  ;;  %v246_v62 = vld [vmem:[#allocation6] sm:$0xff] }
  0x1c   :  { %327 = vmatprep.subr.mxu0 %v63_v6 }
  0x1f   :  { %328 = vmatpush3.xpose.msra.mxu0 %v63_v6 }
  0x20   :  { %329 = vmatprep.subr.mxu0 %v62_v7 }
  0x23   :  { %330 = vmatpush3.xpose.msra.mxu0 %v62_v7 }
  0x24   :  { %331 = vmatprep.subr.mxu0 %v61_v8 }
  0x27   :  { %332 = vmatpush3.xpose.msra.mxu0 %v61_v8  ;;  %v220_v8 = vld [vmem:[#allocation4 + $0x8] sm:$0xff] }
  0x28   :  { %333 = vmatprep.subr.mxu0 %v60_v9 }
  0x2b   :  { %334 = vmatpush3.xpose.msra.mxu0 %v60_v9 }
  0x2c   :  { %335 = vmatprep.subr.mxu0 %v59_v10 }
  0x2f   :  { %336 = vmatpush3.xpose.msra.mxu0 %v59_v10 }
  0x30   :  { %337 = vmatprep.subr.mxu0 %v58_v11 }
  0x33   :  { %338 = vmatpush3.xpose.msra.mxu0 %v58_v11 }
  0x34   :  { %339 = vmatprep.subr.mxu0 %v57_v12 }
  0x37   :  { %340 = vmatpush3.xpose.msra.mxu0 %v57_v12 }
  0x38   :  { %341 = vmatprep.subr.mxu0 %v56_v13 }
  0x3b   :  { %342 = vmatpush3.xpose.msra.mxu0 %v56_v13  ;;  %v247_v13 = vld [vmem:[#allocation6 + $0x8] sm:$0xff] }
  0x3c   :  { %343 = vmatprep.subr.mxu0 %v55_v14 }
  0x3f   :  { %344 = vmatpush3.xpose.msra.mxu0 %v55_v14 }
  0x40   :  { %345 = vmatprep.subr.mxu0 %v54_v15 }
  0x43   :  { %346 = vmatpush3.xpose.msra.mxu0 %v54_v15 }
  0x44   :  { %347 = vmatprep.subr.mxu0 %v53_v16 }
  0x47   :  { %348 = vmatpush3.xpose.msra.mxu0 %v53_v16 }
  0x48   :  { %349 = vmatprep.subr.mxu0 %v52_v17 }
  0x4b   :  { %350 = vmatpush3.xpose.msra.mxu0 %v52_v17 }
  0x4e   :  { %352 = vmatmul.mubr.f32.vlgmr.msra.gmra.mxu0 %v38_v19 }
 0x10e   :  { %v442_v24 = vpop.f32.mrf.mxu0 }
 0x10f   :  { %v180_v27 = vsel %vm176_vm1, %v442_v24, -1e+30 }
 0x110   :  { %v134_v25 = vpop.f32.mrf.mxu0 }
 0x111   :  { %v179_v26 = vsel %vm176_vm1, %v134_v25, -1e+30 }
 0x112   :  { %189 = vmax.xlane.f32.xlu0 %v179_v26 }
 0x116   :  { %191 = vmax.xlane.f32.xlu0 %v180_v27 }
 0x12c   :  { %147 = vperm.xlu0 %361, %v143_v29  }
 0x19b   :  { %v190_v31 = vpop.xlane.xlu0 %189 }
 0x19c   :  { %v193_v32 = vmax.f32 %v187_v30, %v190_v31 }
 0x19e   :  { %v195_v35 = vsub.f32 %v187_v30, %v193_v32  ;;  %232 = vst.msk [vmem:[#allocation3] sm:$0xff] %vm41_vm0, %v193_v32  ;;  %203 = vperm.xlu1 %360, %v193_v32  }
 0x19f   :  { %v192_v36 = vpop.xlane.xlu0 %191 }
 0x1a0   :  { %v194_v37 = vmax.f32 %v188_v33, %v192_v36  ;;  %v197_v1 = vmul.f32 1.442695, %v195_v35 }
 0x1a2   :  { %v196_v38 = vsub.f32 %v188_v33, %v194_v37  ;;  %233 = vst.msk [vmem:[#allocation3 + $0x8] sm:$0xff] %vm41_vm0, %v194_v37  ;;  %208 = vperm.xlu1 %360, %v194_v37  }
 0x1a4   :  { %v199_v2 = vmul.f32 1.442695, %v196_v38 }
 0x1a5   :  { %v261_v30 = vld [vmem:[#allocation3] sm:$0xff] }
 0x1a6   :  { %150 = vperm.xlu1 %360, %v144_v39  }
 0x1a7   :  { %v148_v41 = vpop.permute.xlu0 %147 }
 0x1a8   :  { %vm156_vm4 = vcmp.eq.s32.totalorder %v148_v41, %v296_v40 }
 0x1a9   :  { %v297_v43 = vsel %vm156_vm4, 1.0, %v405_v28  ;;  %v262_v36 = vld [vmem:[#allocation3 + $0x8] sm:$0xff] }
 0x1aa   :  { %v185_v44 = vmul.f32 %v299_v42, %v297_v43 }
 0x1ac   :  { %248 = vadd.xlane.f32.xlu0 %v185_v44  ;;  %v236_v60 = vmul.f32 %v185_v44, %v134_v25 }
 0x219   :  { %v204_v45 = vpop.permute.xlu1 %203 }
 0x21a   :  { %v211_v46 = vsub.f32 %v179_v26, %v204_v45 }
 0x21c   :  { %v213_v47 = vmul.f32 1.442695, %v211_v46 }
 0x21d   :  { %v209_v48 = vpop.permute.xlu1 %208 }
 0x21e   :  { %362 = vpow2.f32 %v213_v47  ;;  %v212_v49 = vsub.f32 %v180_v27, %v209_v48 }
 0x220   :  { %v215_v50 = vmul.f32 1.442695, %v212_v49 }
 0x221   :  { %v151_v53 = vpop.permute.xlu1 %150 }
 0x222   :  { %364 = vpow2.f32 %v215_v50  ;;  %vm157_vm7 = vcmp.eq.s32.totalorder %v151_v53, %v296_v40 }
 0x223   :  { %v298_v58 = vsel %vm157_vm7, 1.0, %v405_v28  ;;  %366 = vpow2.f32 %v197_v1 }
 0x224   :  { %v186_v59 = vmul.f32 %v300_v56, %v298_v58  ;;  %368 = vpow2.f32 %v199_v2 }
 0x226   :  { %v237_v61 = vmul.f32 %v442_v24, %v186_v59 }
 0x22b   :  { %v363_v52 = vpop.eup %362 }
 0x22c   :  { %v217_v54 = vmul.f32 %v363_v52, %v299_v42 }
 0x22e   :  { %223 = vadd.xlane.f32.xlu1 %v217_v54 }
 0x22f   :  { %v365_v55 = vpop.eup %364 }
 0x230   :  { %v218_v57 = vmul.f32 %v365_v55, %v300_v56  ;;  %v367_v3 = vpop.eup %366 }
 0x231   :  { %v221_v5 = vmul.f32 %v367_v3, %v219_v4  ;;  %v369_v6 = vpop.eup %368 }
 0x232   :  { %225 = vadd.xlane.f32.xlu1 %v218_v57  ;;  %v222_v10 = vmul.f32 %v369_v6, %v220_v8 }
 0x235   :  { %v249_v63 = vpop.xlane.xlu0 %248 }
 0x236   :  { %250 = vadd.xlane.f32.xlu1 %v186_v59  ;;  %v252_v0 = vadd.f32 %v249_v63, %v246_v62 }
 0x238   :  { %254 = vst.msk [vmem:[#allocation6] sm:$0xff] %vm41_vm0, %v252_v0 }
 0x23a   :  { %238 = vadd.xlane.f32.xlu1 %v236_v60 }
 0x23e   :  { %240 = vadd.xlane.f32.xlu1 %v237_v61 }
 0x23f   :  { %v259_v17 = vld [vmem:[#allocation6] sm:$0xff] }
 0x240   :  { %v277_v20 = vmax.f32 %v259_v17, 1.0  ;;  %vm283_vm8 = vcmp.gt.f32.partialorder %v259_v17, 0.0 }
 0x2b7   :  { %v224_v7 = vpop.xlane.xlu1 %223 }
 0x2b8   :  { %v227_v9 = vadd.f32 %v224_v7, %v221_v5 }
 0x2ba   :  { %230 = vst.msk [vmem:[#allocation4] sm:$0xff] %vm41_vm0, %v227_v9 }
 0x2bb   :  { %v226_v11 = vpop.xlane.xlu1 %225 }
 0x2bc   :  { %v228_v12 = vadd.f32 %v226_v11, %v222_v10 }
 0x2be   :  { %231 = vst.msk [vmem:[#allocation4 + $0x8] sm:$0xff] %vm41_vm0, %v228_v12 }
 0x2bf   :  { %v251_v14 = vpop.xlane.xlu1 %250 }
 0x2c0   :  { %v253_v15 = vadd.f32 %v251_v14, %v247_v13 }
 0x2c1   :  { %v263_v16 = vld [vmem:[#allocation4] sm:$0xff] }
 0x2c2   :  { %370 = vlog2.f32 %v263_v16  ;;  %255 = vst.msk [vmem:[#allocation6 + $0x8] sm:$0xff] %vm41_vm0, %v253_v15 }
 0x2c3   :  { %v239_v19 = vpop.xlane.xlu1 %238 }
 0x2c4   :  { %v242_v21 = vadd.f32 %v239_v19, %v234_v18 }
 0x2c5   :  { %v264_v22 = vld [vmem:[#allocation4 + $0x8] sm:$0xff] }
 0x2c6   :  { %372 = vlog2.f32 %v264_v22  ;;  %244 = vst.msk [vmem:[#allocation5] sm:$0xff] %vm41_vm0, %v242_v21 }
 0x2c7   :  { %v241_v24 = vpop.xlane.xlu1 %240  ;;  %374 = vrcp.f32 %v277_v20 }
 0x2c8   :  { %v243_v25 = vadd.f32 %v241_v24, %v235_v23 }
 0x2c9   :  { %v260_v26 = vld [vmem:[#allocation6 + $0x8] sm:$0xff] }
 0x2ca   :  { %v278_v27 = vmax.f32 %v260_v26, 1.0  ;;  %245 = vst.msk [vmem:[#allocation5 + $0x8] sm:$0xff] %vm41_vm0, %v243_v25  ;;  %vm284_vm9 = vcmp.gt.f32.partialorder %v260_v26, 0.0 }
 0x2cc   :  { %376 = vrcp.f32 %v278_v27 }
 0x2cd   :  { %v271_v37 = vld [vmem:[#allocation5] sm:$0xff] }
 0x2cf   :  { %v371_v28 = vpop.eup %370 }
 0x2d0   :  { %v266_v29 = vmul.f32 0.6931472, %v371_v28 }
 0x2d1   :  { %v272_v42 = vld [vmem:[#allocation5 + $0x8] sm:$0xff] }
 0x2d2   :  { %v269_v31 = vadd.f32 %v266_v29, %v261_v30 }
 0x2d3   :  { %v373_v32 = vpop.eup %372 }
 0x2d4   :  { %v268_v33 = vmul.f32 0.6931472, %v373_v32  ;;  %v273_v34 = vmul.f32 %v269_v31, %v259_v17  ;;  %v375_v35 = vpop.eup %374 }
 0x2d6   :  { %v270_v38 = vadd.f32 %v268_v33, %v262_v36  ;;  %v275_v39 = vsub.f32 %v271_v37, %v273_v34 }
 0x2d8   :  { %v274_v40 = vmul.f32 %v270_v38, %v260_v26  ;;  %v280_v41 = vmul.f32 %v375_v35, %v275_v39 }
 0x2d9   :  { %v377_v45 = vpop.eup %376 }
 0x2da   :  { %v285_v43 = vmul.f32 -1.0, %v280_v41  ;;  %v276_v44 = vsub.f32 %v272_v42, %v274_v40 }
 0x2dc   :  { %v287_v46 = vsel %vm283_vm8, %v285_v43, 0.0  ;;  %v282_v47 = vmul.f32 %v377_v45, %v276_v44 }
 0x2dd   :  { %289 = vst.msk [vmem:[%s485_s4] sm:$0xff] %vm41_vm0, %v287_v46 }
 0x2de   :  { %v286_v48 = vmul.f32 -1.0, %v282_v47 }
 0x2e0   :  { %v288_v49 = vsel %vm284_vm9, %v286_v48, 0.0 }
 0x2e1   :  { %290 = vst.msk [vmem:[%s485_s4 + $0x8] sm:$0xff] %vm41_vm0, %v288_v49 }
 0x2e2   :  { %295 = vsyncpa [#allocation8], 1 }

</bundles_post_ra>
